<compile_context>
chip_gen: v6e
topology: v6e:2x2x1
jax: 0.10.0
libtpu: 0.0.40
codegen_flags: <defaults>
</compile_context>

<pallas_src>
import functools
import math

import jax
import jax.numpy as jnp
from jax.experimental import pallas as pl
from jax.experimental.pallas import tpu as pltpu


def _layernorm(x, w, b, eps=1e-5):
    mean = jnp.mean(x, axis=-1, keepdims=True)
    var = jnp.mean((x - mean) ** 2, axis=-1, keepdims=True)
    return (x - mean) * jax.lax.rsqrt(var + eps) * w + b


def _gelu_tanh(x):
    # GELU, tanh approximation (== F.gelu(approximate='tanh')); tanh runs on
    # the EUP so the widest tensor in the kernel stays off the VALU.
    c = jnp.float32(0.7978845608028654)      # sqrt(2/pi)
    a = jnp.float32(0.044715)
    return 0.5 * x * (1.0 + jnp.tanh(c * (x + a * x * x * x)))


def block_kernel(x_ref,
                 w_in_ref, b_in_ref, w_out_ref, b_out_ref,
                 ln1_w_ref, ln1_b_ref, ln2_w_ref, ln2_b_ref,
                 w1_ref, b1_ref, w2_ref, b2_ref,
                 o_ref, *, n_head):
    x = x_ref[0]                                  # (L, E) fp32
    L, E = x.shape
    D = E // n_head
    scale = jnp.float32(1.0 / math.sqrt(D))
    neg_inf = jnp.float32(-jnp.inf)

    # ---------------- pre-LN multi-head self-attention + residual ----------
    h = _layernorm(x, ln1_w_ref[...], ln1_b_ref[...])
    qkv = jnp.dot(h.astype(jnp.bfloat16), w_in_ref[...],
                  preferred_element_type=jnp.float32) + b_in_ref[...]   # (L, 3E)
    q = qkv[:, 0 * E:1 * E] * scale
    k = qkv[:, 1 * E:2 * E]
    v = qkv[:, 2 * E:3 * E]

    def to_heads(t):                              # (L, E) -> (H, L, D)
        return jnp.stack([t[:, hd * D:(hd + 1) * D] for hd in range(n_head)],
                         axis=0)

    qh = to_heads(q).astype(jnp.bfloat16)
    kh = to_heads(k).astype(jnp.bfloat16)
    vh = to_heads(v).astype(jnp.bfloat16)

    # batched scores + causal softmax (diagonal always unmasked -> no NaNs)
    s = jnp.einsum('hqd,hkd->hqk', qh, kh,
                   preferred_element_type=jnp.float32)                  # (H, L, L)
    row = jax.lax.broadcasted_iota(jnp.int32, (L, L), 0)
    col = jax.lax.broadcasted_iota(jnp.int32, (L, L), 1)
    s = jnp.where(col > row, neg_inf, s)
    m = jnp.max(s, axis=-1, keepdims=True)
    p = jnp.exp(s - m)
    denom = jnp.sum(p, axis=-1, keepdims=True)
    p = p * pl.reciprocal(denom, approx=True)

    o_heads = jnp.einsum('hqk,hkd->hqd', p.astype(jnp.bfloat16), vh,
                         preferred_element_type=jnp.float32)            # (H, L, D)

    # out-projection: per-head contribution, summed over heads (no concat)
    attn = jnp.einsum('hqd,hde->hqe', o_heads.astype(jnp.bfloat16),
                      w_out_ref[...],
                      preferred_element_type=jnp.float32)               # (H, L, E)
    attn = jnp.sum(attn, axis=0) + b_out_ref[...]                       # (L, E)
    x1 = x + attn                                                       # residual 1

    # ---------------- pre-LN feed-forward (Linear -> GELU -> Linear) -------
    h2 = _layernorm(x1, ln2_w_ref[...], ln2_b_ref[...])
    ff = jnp.dot(h2.astype(jnp.bfloat16), w1_ref[...],
                 preferred_element_type=jnp.float32) + b1_ref[...]      # (L, 4E)
    ff = _gelu_tanh(ff)
    ff = jnp.dot(ff.astype(jnp.bfloat16), w2_ref[...],
                 preferred_element_type=jnp.float32) + b2_ref[...]      # (L, E)
    o_ref[0] = (x1 + ff).astype(o_ref.dtype)                            # residual 2


def prepare_kernel_params(params, n_head):
    """Host-side layout prep: transpose / head-split / bf16-cast the weights."""
    E = params["w_out"].shape[0]
    D = E // n_head
    wdt = jnp.bfloat16
    return {
        "w_in_t": params["w_in"].T.astype(wdt),                       # (E, 3E)
        "b_in": params["b_in"].astype(jnp.float32),                   # (1, 3E)
        "w_out_hde": params["w_out"].T.reshape(n_head, D, E).astype(wdt),
        "b_out": params["b_out"].astype(jnp.float32),                 # (1, E)
        "ln1_w": params["ln1_w"].astype(jnp.float32),
        "ln1_b": params["ln1_b"].astype(jnp.float32),
        "ln2_w": params["ln2_w"].astype(jnp.float32),
        "ln2_b": params["ln2_b"].astype(jnp.float32),
        "w1_t": params["w1"].T.astype(wdt),                           # (E, 4E)
        "b1": params["b1"].astype(jnp.float32),                       # (1, 4E)
        "w2_t": params["w2"].T.astype(wdt),                           # (4E, E)
        "b2": params["b2"].astype(jnp.float32),                       # (1, E)
    }


def transformer_block(x, kparams, n_head):
    """x: (B, L, E) float32. kparams: output of prepare_kernel_params."""
    B, L, E = x.shape
    param_list = [
        kparams["w_in_t"], kparams["b_in"], kparams["w_out_hde"], kparams["b_out"],
        kparams["ln1_w"], kparams["ln1_b"], kparams["ln2_w"], kparams["ln2_b"],
        kparams["w1_t"], kparams["b1"], kparams["w2_t"], kparams["b2"],
    ]

    def full_spec(shape):
        nd = len(shape)
        return pl.BlockSpec(shape, lambda b, _nd=nd: (0,) * _nd)

    in_specs = [pl.BlockSpec((1, L, E), lambda b: (b, 0, 0))]
    in_specs += [full_spec(p.shape) for p in param_list]

    kernel = functools.partial(block_kernel, n_head=n_head)
    return pl.pallas_call(
        kernel,
        out_shape=jax.ShapeDtypeStruct((B, L, E), jnp.float32),
        grid_spec=pltpu.PrefetchScalarGridSpec(
            num_scalar_prefetch=0,
            grid=(B,),                                 # B=2 even -> both v7x TCs
            in_specs=in_specs,
            out_specs=pl.BlockSpec((1, L, E), lambda b: (b, 0, 0)),
        ),
        compiler_params=pltpu.CompilerParams(
            dimension_semantics=("parallel",),
            vmem_limit_bytes=64 * 1024 * 1024),
    )(x, *param_list)


def init_params(key, n_embd):
    """Weights in the PyTorch nn.Linear / nn.MultiheadAttention convention."""
    E = n_embd
    ks = jax.random.split(key, 5)
    scale = 0.02
    return {
        "w_in": (scale * jax.random.normal(ks[0], (3 * E, E))).astype(jnp.float32),
        "b_in": jnp.zeros((1, 3 * E), jnp.float32),
        "w_out": (scale * jax.random.normal(ks[1], (E, E))).astype(jnp.float32),
        "b_out": jnp.zeros((1, E), jnp.float32),
        "ln1_w": jnp.ones((1, E), jnp.float32),
        "ln1_b": jnp.zeros((1, E), jnp.float32),
        "ln2_w": jnp.ones((1, E), jnp.float32),
        "ln2_b": jnp.zeros((1, E), jnp.float32),
        "w1": (scale * jax.random.normal(ks[2], (4 * E, E))).astype(jnp.float32),
        "b1": jnp.zeros((1, 4 * E), jnp.float32),
        "w2": (scale * jax.random.normal(ks[3], (E, 4 * E))).astype(jnp.float32),
        "b2": jnp.zeros((1, E), jnp.float32),
    }


if __name__ == "__main__":
    # Small shapes consistent with the module: batch=2, seq=8, n_embd=32, n_head=4
    B, L, E, H = 2, 8, 32, 4
    context_size = 16
    assert L <= context_size  # mirrors the forward() assertion

    key = jax.random.PRNGKey(0)
    kx, kp = jax.random.split(key)
    x = jax.random.normal(kx, (B, L, E), dtype=jnp.float32)
    params = init_params(kp, E)
    kparams = prepare_kernel_params(params, n_head=H)

    out = transformer_block(x, kparams, n_head=H)
    out = jax.block_until_ready(out)
    assert out.shape == (B, L, E) and out.dtype == jnp.float32
    assert bool(jnp.all(jnp.isfinite(out)))
    print("KERNEL_OK")
</pallas_src>

<mosaic_0001>
module attributes {stable_mosaic.version = 11 : i64} {
  func.func @block_kernel(%arg0: i32, %arg1: memref<1x8x32xf32, #tpu.memory_space<vmem>>, %arg2: memref<32x96xbf16, #tpu.memory_space<vmem>>, %arg3: memref<1x96xf32, #tpu.memory_space<vmem>>, %arg4: memref<4x8x32xbf16, #tpu.memory_space<vmem>>, %arg5: memref<1x32xf32, #tpu.memory_space<vmem>>, %arg6: memref<1x32xf32, #tpu.memory_space<vmem>>, %arg7: memref<1x32xf32, #tpu.memory_space<vmem>>, %arg8: memref<1x32xf32, #tpu.memory_space<vmem>>, %arg9: memref<1x32xf32, #tpu.memory_space<vmem>>, %arg10: memref<32x128xbf16, #tpu.memory_space<vmem>>, %arg11: memref<1x128xf32, #tpu.memory_space<vmem>>, %arg12: memref<128x32xbf16, #tpu.memory_space<vmem>>, %arg13: memref<1x32xf32, #tpu.memory_space<vmem>>, %arg14: memref<1x8x32xf32, #tpu.memory_space<vmem>>) attributes {dimension_semantics = [#tpu.dimension_semantics<parallel>], iteration_bounds = array<i64: 2>, scalar_prefetch = 0 : i64, scratch_operands = 0 : i64, tpu.core_type = #tpu.core_type<tc>, window_params = [{transform_indices = @transform_0, window_bounds = array<i64: 1, 8, 32>}, {pipeline_mode = #tpu.pipeline_mode<synchronous>, transform_indices = @transform_1, window_bounds = array<i64: 32, 96>}, {pipeline_mode = #tpu.pipeline_mode<synchronous>, transform_indices = @transform_2, window_bounds = array<i64: 1, 96>}, {pipeline_mode = #tpu.pipeline_mode<synchronous>, transform_indices = @transform_3, window_bounds = array<i64: 4, 8, 32>}, {pipeline_mode = #tpu.pipeline_mode<synchronous>, transform_indices = @transform_4, window_bounds = array<i64: 1, 32>}, {pipeline_mode = #tpu.pipeline_mode<synchronous>, transform_indices = @transform_5, window_bounds = array<i64: 1, 32>}, {pipeline_mode = #tpu.pipeline_mode<synchronous>, transform_indices = @transform_6, window_bounds = array<i64: 1, 32>}, {pipeline_mode = #tpu.pipeline_mode<synchronous>, transform_indices = @transform_7, window_bounds = array<i64: 1, 32>}, {pipeline_mode = #tpu.pipeline_mode<synchronous>, transform_indices = @transform_8, window_bounds = array<i64: 1, 32>}, {pipeline_mode = #tpu.pipeline_mode<synchronous>, transform_indices = @transform_9, window_bounds = array<i64: 32, 128>}, {pipeline_mode = #tpu.pipeline_mode<synchronous>, transform_indices = @transform_10, window_bounds = array<i64: 1, 128>}, {pipeline_mode = #tpu.pipeline_mode<synchronous>, transform_indices = @transform_11, window_bounds = array<i64: 128, 32>}, {pipeline_mode = #tpu.pipeline_mode<synchronous>, transform_indices = @transform_12, window_bounds = array<i64: 1, 32>}, {transform_indices = @transform_13, window_bounds = array<i64: 1, 8, 32>}]} {
    %c0 = arith.constant 0 : index
    %c0_0 = arith.constant 0 : index
    %c0_1 = arith.constant 0 : index
    %0 = vector.load %arg1[%c0, %c0_0, %c0_1] : memref<1x8x32xf32, #tpu.memory_space<vmem>>, vector<1x8x32xf32>
    %1 = vector.shape_cast %0 : vector<1x8x32xf32> to vector<8x32xf32>
    %c0_2 = arith.constant 0 : index
    %c0_3 = arith.constant 0 : index
    %2 = vector.load %arg6[%c0_2, %c0_3] : memref<1x32xf32, #tpu.memory_space<vmem>>, vector<1x32xf32>
    %c0_4 = arith.constant 0 : index
    %c0_5 = arith.constant 0 : index
    %3 = vector.load %arg7[%c0_4, %c0_5] : memref<1x32xf32, #tpu.memory_space<vmem>>, vector<1x32xf32>
    %cst = arith.constant dense<0.000000e+00> : vector<8xf32>
    %4 = vector.multi_reduction <add>, %1, %cst [1] : vector<8x32xf32> to vector<8xf32>
    %5 = vector.shape_cast %4 : vector<8xf32> to vector<8x1xf32>
    %cst_6 = arith.constant 3.200000e+01 : f32
    %6 = vector.broadcast %cst_6 : f32 to vector<8x1xf32>
    %7 = arith.divf %5, %6 : vector<8x1xf32>
    %8 = vector.broadcast %7 : vector<8x1xf32> to vector<8x32xf32>
    %9 = arith.subf %1, %8 : vector<8x32xf32>
    %10 = arith.mulf %9, %9 : vector<8x32xf32>
    %cst_7 = arith.constant dense<0.000000e+00> : vector<8xf32>
    %11 = vector.multi_reduction <add>, %10, %cst_7 [1] : vector<8x32xf32> to vector<8xf32>
    %12 = vector.shape_cast %11 : vector<8xf32> to vector<8x1xf32>
    %cst_8 = arith.constant 3.200000e+01 : f32
    %13 = vector.broadcast %cst_8 : f32 to vector<8x1xf32>
    %14 = arith.divf %12, %13 : vector<8x1xf32>
    %15 = vector.broadcast %7 : vector<8x1xf32> to vector<8x32xf32>
    %16 = arith.subf %1, %15 : vector<8x32xf32>
    %cst_9 = arith.constant 9.99999974E-6 : f32
    %17 = vector.broadcast %cst_9 : f32 to vector<8x1xf32>
    %18 = arith.addf %14, %17 : vector<8x1xf32>
    %19 = math.rsqrt %18 : vector<8x1xf32>
    %20 = vector.broadcast %19 : vector<8x1xf32> to vector<8x32xf32>
    %21 = arith.mulf %16, %20 : vector<8x32xf32>
    %22 = vector.broadcast %2 : vector<1x32xf32> to vector<8x32xf32>
    %23 = arith.mulf %21, %22 : vector<8x32xf32>
    %24 = vector.broadcast %3 : vector<1x32xf32> to vector<8x32xf32>
    %25 = arith.addf %23, %24 : vector<8x32xf32>
    %26 = arith.truncf %25 : vector<8x32xf32> to vector<8x32xbf16>
    %c0_10 = arith.constant 0 : index
    %c0_11 = arith.constant 0 : index
    %27 = vector.load %arg2[%c0_10, %c0_11] : memref<32x96xbf16, #tpu.memory_space<vmem>>, vector<32x96xbf16>
    %cst_12 = arith.constant dense<0.000000e+00> : vector<8x96xf32>
    %28 = tpu.matmul %26, %27, %cst_12 {dimension_numbers = #tpu.dot_dimension_numbers<[1], [0], [0], [1], [0, 0, 1, 1], [], []>} : vector<8x32xbf16>, vector<32x96xbf16>, vector<8x96xf32> -> vector<8x96xf32>
    %c0_13 = arith.constant 0 : index
    %c0_14 = arith.constant 0 : index
    %29 = vector.load %arg3[%c0_13, %c0_14] : memref<1x96xf32, #tpu.memory_space<vmem>>, vector<1x96xf32>
    %30 = vector.broadcast %29 : vector<1x96xf32> to vector<8x96xf32>
    %31 = arith.addf %28, %30 : vector<8x96xf32>
    %32 = vector.extract_strided_slice %31 {offsets = [0, 0], sizes = [8, 32], strides = [1, 1]} : vector<8x96xf32> to vector<8x32xf32>
    %cst_15 = arith.constant 0.353553385 : f32
    %33 = vector.broadcast %cst_15 : f32 to vector<8x32xf32>
    %34 = arith.mulf %32, %33 : vector<8x32xf32>
    %35 = vector.extract_strided_slice %31 {offsets = [0, 32], sizes = [8, 32], strides = [1, 1]} : vector<8x96xf32> to vector<8x32xf32>
    %36 = vector.extract_strided_slice %31 {offsets = [0, 64], sizes = [8, 32], strides = [1, 1]} : vector<8x96xf32> to vector<8x32xf32>
    %37 = vector.extract_strided_slice %34 {offsets = [0, 0], sizes = [8, 8], strides = [1, 1]} : vector<8x32xf32> to vector<8x8xf32>
    %38 = vector.extract_strided_slice %34 {offsets = [0, 8], sizes = [8, 8], strides = [1, 1]} : vector<8x32xf32> to vector<8x8xf32>
    %39 = vector.extract_strided_slice %34 {offsets = [0, 16], sizes = [8, 8], strides = [1, 1]} : vector<8x32xf32> to vector<8x8xf32>
    %40 = vector.extract_strided_slice %34 {offsets = [0, 24], sizes = [8, 8], strides = [1, 1]} : vector<8x32xf32> to vector<8x8xf32>
    %41 = vector.shape_cast %37 : vector<8x8xf32> to vector<1x8x8xf32>
    %42 = vector.shape_cast %38 : vector<8x8xf32> to vector<1x8x8xf32>
    %43 = vector.shape_cast %39 : vector<8x8xf32> to vector<1x8x8xf32>
    %44 = vector.shape_cast %40 : vector<8x8xf32> to vector<1x8x8xf32>
    %45 = tpu.concatenate %41, %42, %43, %44 in 0 : vector<1x8x8xf32>, vector<1x8x8xf32>, vector<1x8x8xf32>, vector<1x8x8xf32> -> vector<4x8x8xf32>
    %46 = arith.truncf %45 : vector<4x8x8xf32> to vector<4x8x8xbf16>
    %47 = vector.extract_strided_slice %35 {offsets = [0, 0], sizes = [8, 8], strides = [1, 1]} : vector<8x32xf32> to vector<8x8xf32>
    %48 = vector.extract_strided_slice %35 {offsets = [0, 8], sizes = [8, 8], strides = [1, 1]} : vector<8x32xf32> to vector<8x8xf32>
    %49 = vector.extract_strided_slice %35 {offsets = [0, 16], sizes = [8, 8], strides = [1, 1]} : vector<8x32xf32> to vector<8x8xf32>
    %50 = vector.extract_strided_slice %35 {offsets = [0, 24], sizes = [8, 8], strides = [1, 1]} : vector<8x32xf32> to vector<8x8xf32>
    %51 = vector.shape_cast %47 : vector<8x8xf32> to vector<1x8x8xf32>
    %52 = vector.shape_cast %48 : vector<8x8xf32> to vector<1x8x8xf32>
    %53 = vector.shape_cast %49 : vector<8x8xf32> to vector<1x8x8xf32>
    %54 = vector.shape_cast %50 : vector<8x8xf32> to vector<1x8x8xf32>
    %55 = tpu.concatenate %51, %52, %53, %54 in 0 : vector<1x8x8xf32>, vector<1x8x8xf32>, vector<1x8x8xf32>, vector<1x8x8xf32> -> vector<4x8x8xf32>
    %56 = arith.truncf %55 : vector<4x8x8xf32> to vector<4x8x8xbf16>
    %57 = vector.extract_strided_slice %36 {offsets = [0, 0], sizes = [8, 8], strides = [1, 1]} : vector<8x32xf32> to vector<8x8xf32>
    %58 = vector.extract_strided_slice %36 {offsets = [0, 8], sizes = [8, 8], strides = [1, 1]} : vector<8x32xf32> to vector<8x8xf32>
    %59 = vector.extract_strided_slice %36 {offsets = [0, 16], sizes = [8, 8], strides = [1, 1]} : vector<8x32xf32> to vector<8x8xf32>
    %60 = vector.extract_strided_slice %36 {offsets = [0, 24], sizes = [8, 8], strides = [1, 1]} : vector<8x32xf32> to vector<8x8xf32>
    %61 = vector.shape_cast %57 : vector<8x8xf32> to vector<1x8x8xf32>
    %62 = vector.shape_cast %58 : vector<8x8xf32> to vector<1x8x8xf32>
    %63 = vector.shape_cast %59 : vector<8x8xf32> to vector<1x8x8xf32>
    %64 = vector.shape_cast %60 : vector<8x8xf32> to vector<1x8x8xf32>
    %65 = tpu.concatenate %61, %62, %63, %64 in 0 : vector<1x8x8xf32>, vector<1x8x8xf32>, vector<1x8x8xf32>, vector<1x8x8xf32> -> vector<4x8x8xf32>
    %66 = arith.truncf %65 : vector<4x8x8xf32> to vector<4x8x8xbf16>
    "tpu.trace_start"() <{level = 10 : i32, message = "hqd,hkd->hqk"}> : () -> ()
    %cst_16 = arith.constant dense<0.000000e+00> : vector<4x8x8xf32>
    %67 = tpu.matmul %46, %56, %cst_16 {dimension_numbers = #tpu.dot_dimension_numbers<[2], [2], [1], [1], [0, 0, 0, 1, 1, 1], [0], [0]>} : vector<4x8x8xbf16>, vector<4x8x8xbf16>, vector<4x8x8xf32> -> vector<4x8x8xf32>
    "tpu.trace_stop"() : () -> ()
    %68 = tpu.iota {dimensions = array<i32: 0>} : vector<8x8xi32>
    %69 = tpu.iota {dimensions = array<i32: 1>} : vector<8x8xi32>
    %70 = arith.cmpi sgt, %69, %68 : vector<8x8xi32>
    %cst_17 = arith.constant 0xFF800000 : f32
    %71 = vector.shape_cast %70 : vector<8x8xi1> to vector<1x8x8xi1>
    %72 = vector.broadcast %71 : vector<1x8x8xi1> to vector<4x8x8xi1>
    %73 = vector.broadcast %cst_17 : f32 to vector<4x8x8xf32>
    %74 = arith.select %72, %73, %67 : vector<4x8x8xi1>, vector<4x8x8xf32>
    %cst_18 = arith.constant dense<0xFF800000> : vector<4x8xf32>
    %75 = vector.multi_reduction <maximumf>, %74, %cst_18 [2] : vector<4x8x8xf32> to vector<4x8xf32>
    %76 = vector.shape_cast %75 : vector<4x8xf32> to vector<4x8x1xf32>
    %77 = vector.broadcast %76 : vector<4x8x1xf32> to vector<4x8x8xf32>
    %78 = arith.subf %74, %77 : vector<4x8x8xf32>
    %79 = math.exp %78 : vector<4x8x8xf32>
    %cst_19 = arith.constant dense<0.000000e+00> : vector<4x8xf32>
    %80 = vector.multi_reduction <add>, %79, %cst_19 [2] : vector<4x8x8xf32> to vector<4x8xf32>
    %81 = vector.shape_cast %80 : vector<4x8xf32> to vector<4x8x1xf32>
    %82 = tpu.reciprocal %81 {approx = true} : vector<4x8x1xf32> -> vector<4x8x1xf32>
    %83 = vector.broadcast %82 : vector<4x8x1xf32> to vector<4x8x8xf32>
    %84 = arith.mulf %79, %83 : vector<4x8x8xf32>
    %85 = arith.truncf %84 : vector<4x8x8xf32> to vector<4x8x8xbf16>
    "tpu.trace_start"() <{level = 10 : i32, message = "hqk,hkd->hqd"}> : () -> ()
    %cst_20 = arith.constant dense<0.000000e+00> : vector<4x8x8xf32>
    %86 = tpu.matmul %85, %66, %cst_20 {dimension_numbers = #tpu.dot_dimension_numbers<[2], [1], [1], [2], [0, 0, 0, 1, 1, 2], [0], [0]>} : vector<4x8x8xbf16>, vector<4x8x8xbf16>, vector<4x8x8xf32> -> vector<4x8x8xf32>
    "tpu.trace_stop"() : () -> ()
    %87 = arith.truncf %86 : vector<4x8x8xf32> to vector<4x8x8xbf16>
    %c0_21 = arith.constant 0 : index
    %c0_22 = arith.constant 0 : index
    %c0_23 = arith.constant 0 : index
    %88 = vector.load %arg4[%c0_21, %c0_22, %c0_23] : memref<4x8x32xbf16, #tpu.memory_space<vmem>>, vector<4x8x32xbf16>
    "tpu.trace_start"() <{level = 10 : i32, message = "hqd,hde->hqe"}> : () -> ()
    %cst_24 = arith.constant dense<0.000000e+00> : vector<4x8x32xf32>
    %89 = tpu.matmul %87, %88, %cst_24 {dimension_numbers = #tpu.dot_dimension_numbers<[2], [1], [1], [2], [0, 0, 0, 1, 1, 2], [0], [0]>} : vector<4x8x8xbf16>, vector<4x8x32xbf16>, vector<4x8x32xf32> -> vector<4x8x32xf32>
    "tpu.trace_stop"() : () -> ()
    %cst_25 = arith.constant dense<0.000000e+00> : vector<8x32xf32>
    %90 = vector.multi_reduction <add>, %89, %cst_25 [0] : vector<4x8x32xf32> to vector<8x32xf32>
    %c0_26 = arith.constant 0 : index
    %c0_27 = arith.constant 0 : index
    %91 = vector.load %arg5[%c0_26, %c0_27] : memref<1x32xf32, #tpu.memory_space<vmem>>, vector<1x32xf32>
    %92 = vector.broadcast %91 : vector<1x32xf32> to vector<8x32xf32>
    %93 = arith.addf %90, %92 : vector<8x32xf32>
    %94 = arith.addf %1, %93 : vector<8x32xf32>
    %c0_28 = arith.constant 0 : index
    %c0_29 = arith.constant 0 : index
    %95 = vector.load %arg8[%c0_28, %c0_29] : memref<1x32xf32, #tpu.memory_space<vmem>>, vector<1x32xf32>
    %c0_30 = arith.constant 0 : index
    %c0_31 = arith.constant 0 : index
    %96 = vector.load %arg9[%c0_30, %c0_31] : memref<1x32xf32, #tpu.memory_space<vmem>>, vector<1x32xf32>
    %cst_32 = arith.constant dense<0.000000e+00> : vector<8xf32>
    %97 = vector.multi_reduction <add>, %94, %cst_32 [1] : vector<8x32xf32> to vector<8xf32>
    %98 = vector.shape_cast %97 : vector<8xf32> to vector<8x1xf32>
    %cst_33 = arith.constant 3.200000e+01 : f32
    %99 = vector.broadcast %cst_33 : f32 to vector<8x1xf32>
    %100 = arith.divf %98, %99 : vector<8x1xf32>
    %101 = vector.broadcast %100 : vector<8x1xf32> to vector<8x32xf32>
    %102 = arith.subf %94, %101 : vector<8x32xf32>
    %103 = arith.mulf %102, %102 : vector<8x32xf32>
    %cst_34 = arith.constant dense<0.000000e+00> : vector<8xf32>
    %104 = vector.multi_reduction <add>, %103, %cst_34 [1] : vector<8x32xf32> to vector<8xf32>
    %105 = vector.shape_cast %104 : vector<8xf32> to vector<8x1xf32>
    %cst_35 = arith.constant 3.200000e+01 : f32
    %106 = vector.broadcast %cst_35 : f32 to vector<8x1xf32>
    %107 = arith.divf %105, %106 : vector<8x1xf32>
    %108 = vector.broadcast %100 : vector<8x1xf32> to vector<8x32xf32>
    %109 = arith.subf %94, %108 : vector<8x32xf32>
    %cst_36 = arith.constant 9.99999974E-6 : f32
    %110 = vector.broadcast %cst_36 : f32 to vector<8x1xf32>
    %111 = arith.addf %107, %110 : vector<8x1xf32>
    %112 = math.rsqrt %111 : vector<8x1xf32>
    %113 = vector.broadcast %112 : vector<8x1xf32> to vector<8x32xf32>
    %114 = arith.mulf %109, %113 : vector<8x32xf32>
    %115 = vector.broadcast %95 : vector<1x32xf32> to vector<8x32xf32>
    %116 = arith.mulf %114, %115 : vector<8x32xf32>
    %117 = vector.broadcast %96 : vector<1x32xf32> to vector<8x32xf32>
    %118 = arith.addf %116, %117 : vector<8x32xf32>
    %119 = arith.truncf %118 : vector<8x32xf32> to vector<8x32xbf16>
    %c0_37 = arith.constant 0 : index
    %c0_38 = arith.constant 0 : index
    %120 = vector.load %arg10[%c0_37, %c0_38] : memref<32x128xbf16, #tpu.memory_space<vmem>>, vector<32x128xbf16>
    %cst_39 = arith.constant dense<0.000000e+00> : vector<8x128xf32>
    %121 = tpu.matmul %119, %120, %cst_39 {dimension_numbers = #tpu.dot_dimension_numbers<[1], [0], [0], [1], [0, 0, 1, 1], [], []>} : vector<8x32xbf16>, vector<32x128xbf16>, vector<8x128xf32> -> vector<8x128xf32>
    %c0_40 = arith.constant 0 : index
    %c0_41 = arith.constant 0 : index
    %122 = vector.load %arg11[%c0_40, %c0_41] : memref<1x128xf32, #tpu.memory_space<vmem>>, vector<1x128xf32>
    %123 = vector.broadcast %122 : vector<1x128xf32> to vector<8x128xf32>
    %124 = arith.addf %121, %123 : vector<8x128xf32>
    %cst_42 = arith.constant 5.000000e-01 : f32
    %125 = vector.broadcast %cst_42 : f32 to vector<8x128xf32>
    %126 = arith.mulf %125, %124 : vector<8x128xf32>
    %cst_43 = arith.constant 4.471500e-02 : f32
    %127 = vector.broadcast %cst_43 : f32 to vector<8x128xf32>
    %128 = arith.mulf %127, %124 : vector<8x128xf32>
    %129 = arith.mulf %128, %124 : vector<8x128xf32>
    %130 = arith.mulf %129, %124 : vector<8x128xf32>
    %131 = arith.addf %124, %130 : vector<8x128xf32>
    %cst_44 = arith.constant 0.797884583 : f32
    %132 = vector.broadcast %cst_44 : f32 to vector<8x128xf32>
    %133 = arith.mulf %132, %131 : vector<8x128xf32>
    %134 = math.tanh %133 : vector<8x128xf32>
    %cst_45 = arith.constant 1.000000e+00 : f32
    %135 = vector.broadcast %cst_45 : f32 to vector<8x128xf32>
    %136 = arith.addf %135, %134 : vector<8x128xf32>
    %137 = arith.mulf %126, %136 : vector<8x128xf32>
    %138 = arith.truncf %137 : vector<8x128xf32> to vector<8x128xbf16>
    %c0_46 = arith.constant 0 : index
    %c0_47 = arith.constant 0 : index
    %139 = vector.load %arg12[%c0_46, %c0_47] : memref<128x32xbf16, #tpu.memory_space<vmem>>, vector<128x32xbf16>
    %cst_48 = arith.constant dense<0.000000e+00> : vector<8x32xf32>
    %140 = tpu.matmul %138, %139, %cst_48 {dimension_numbers = #tpu.dot_dimension_numbers<[1], [0], [0], [1], [0, 0, 1, 1], [], []>} : vector<8x128xbf16>, vector<128x32xbf16>, vector<8x32xf32> -> vector<8x32xf32>
    %c0_49 = arith.constant 0 : index
    %c0_50 = arith.constant 0 : index
    %141 = vector.load %arg13[%c0_49, %c0_50] : memref<1x32xf32, #tpu.memory_space<vmem>>, vector<1x32xf32>
    %142 = vector.broadcast %141 : vector<1x32xf32> to vector<8x32xf32>
    %143 = arith.addf %140, %142 : vector<8x32xf32>
    %144 = arith.addf %94, %143 : vector<8x32xf32>
    %c0_51 = arith.constant 0 : index
    %c0_52 = arith.constant 0 : index
    %c0_53 = arith.constant 0 : index
    %145 = vector.load %arg14[%c0_51, %c0_52, %c0_53] : memref<1x8x32xf32, #tpu.memory_space<vmem>>, vector<1x8x32xf32>
    %146 = vector.shape_cast %145 : vector<1x8x32xf32> to vector<8x32xf32>
    %147 = vector.shape_cast %144 : vector<8x32xf32> to vector<1x8x32xf32>
    tpu.vector_store %arg14[%c0_51, %c0_52, %c0_53], %147 {strides = array<i32>} : memref<1x8x32xf32, #tpu.memory_space<vmem>>, vector<1x8x32xf32>,
    return
  }
  func.func @transform_0(%arg0: i32) -> (i32, i32, i32) {
    %c0_i32 = arith.constant 0 : i32
    %c0_i32_0 = arith.constant 0 : i32
    %c0_i32_1 = arith.constant 0 : i32
    return %arg0, %c0_i32, %c0_i32_0 : i32, i32, i32
  }
  func.func @transform_1(%arg0: i32) -> (i32, i32) {
    %c0_i32 = arith.constant 0 : i32
    %c0_i32_0 = arith.constant 0 : i32
    %c0_i32_1 = arith.constant 0 : i32
    return %c0_i32, %c0_i32_0 : i32, i32
  }
  func.func @transform_2(%arg0: i32) -> (i32, i32) {
    %c0_i32 = arith.constant 0 : i32
    %c0_i32_0 = arith.constant 0 : i32
    %c0_i32_1 = arith.constant 0 : i32
    return %c0_i32, %c0_i32_0 : i32, i32
  }
  func.func @transform_3(%arg0: i32) -> (i32, i32, i32) {
    %c0_i32 = arith.constant 0 : i32
    %c0_i32_0 = arith.constant 0 : i32
    %c0_i32_1 = arith.constant 0 : i32
    %c0_i32_2 = arith.constant 0 : i32
    return %c0_i32, %c0_i32_0, %c0_i32_1 : i32, i32, i32
  }
  func.func @transform_4(%arg0: i32) -> (i32, i32) {
    %c0_i32 = arith.constant 0 : i32
    %c0_i32_0 = arith.constant 0 : i32
    %c0_i32_1 = arith.constant 0 : i32
    return %c0_i32, %c0_i32_0 : i32, i32
  }
  func.func @transform_5(%arg0: i32) -> (i32, i32) {
    %c0_i32 = arith.constant 0 : i32
    %c0_i32_0 = arith.constant 0 : i32
    %c0_i32_1 = arith.constant 0 : i32
    return %c0_i32, %c0_i32_0 : i32, i32
  }
  func.func @transform_6(%arg0: i32) -> (i32, i32) {
    %c0_i32 = arith.constant 0 : i32
    %c0_i32_0 = arith.constant 0 : i32
    %c0_i32_1 = arith.constant 0 : i32
    return %c0_i32, %c0_i32_0 : i32, i32
  }
  func.func @transform_7(%arg0: i32) -> (i32, i32) {
    %c0_i32 = arith.constant 0 : i32
    %c0_i32_0 = arith.constant 0 : i32
    %c0_i32_1 = arith.constant 0 : i32
    return %c0_i32, %c0_i32_0 : i32, i32
  }
  func.func @transform_8(%arg0: i32) -> (i32, i32) {
    %c0_i32 = arith.constant 0 : i32
    %c0_i32_0 = arith.constant 0 : i32
    %c0_i32_1 = arith.constant 0 : i32
    return %c0_i32, %c0_i32_0 : i32, i32
  }
  func.func @transform_9(%arg0: i32) -> (i32, i32) {
    %c0_i32 = arith.constant 0 : i32
    %c0_i32_0 = arith.constant 0 : i32
    %c0_i32_1 = arith.constant 0 : i32
    return %c0_i32, %c0_i32_0 : i32, i32
  }
  func.func @transform_10(%arg0: i32) -> (i32, i32) {
    %c0_i32 = arith.constant 0 : i32
    %c0_i32_0 = arith.constant 0 : i32
    %c0_i32_1 = arith.constant 0 : i32
    return %c0_i32, %c0_i32_0 : i32, i32
  }
  func.func @transform_11(%arg0: i32) -> (i32, i32) {
    %c0_i32 = arith.constant 0 : i32
    %c0_i32_0 = arith.constant 0 : i32
    %c0_i32_1 = arith.constant 0 : i32
    return %c0_i32, %c0_i32_0 : i32, i32
  }
  func.func @transform_12(%arg0: i32) -> (i32, i32) {
    %c0_i32 = arith.constant 0 : i32
    %c0_i32_0 = arith.constant 0 : i32
    %c0_i32_1 = arith.constant 0 : i32
    return %c0_i32, %c0_i32_0 : i32, i32
  }
  func.func @transform_13(%arg0: i32) -> (i32, i32, i32) {
    %c0_i32 = arith.constant 0 : i32
    %c0_i32_0 = arith.constant 0 : i32
    %c0_i32_1 = arith.constant 0 : i32
    return %arg0, %c0_i32, %c0_i32_0 : i32, i32, i32
  }
}

</mosaic_0001>

<bundles_post_ra>
// kernel: tpu_custom_call.1
= control target key start
LH: loop header
LB: loop body
LE: loop exit
PB: predicated region body
PF: predicated region fallthrough
CT: control target
= control target key end

     0   :  { %s2227_s0 = inlined_call_operand.vmem [shape: f32[2,8,32], index: 0, kind: input, shape index: {}]   ;;  %s2228_s1 = inlined_call_operand.vmem [shape: bf16[32,96], index: 1, kind: input, shape index: {}]   ;;  %s2229_s2 = inlined_call_operand.vmem [shape: f32[1,96], index: 2, kind: input, shape index: {}]   ;;  %s2230_s3 = inlined_call_operand.vmem [shape: bf16[4,8,32], index: 3, kind: input, shape index: {}]   ;;  %s2231_s4 = inlined_call_operand.vmem [shape: f32[1,32], index: 4, kind: input, shape index: {}]   ;;  %s2232_s5 = inlined_call_operand.vmem [shape: f32[1,32], index: 5, kind: input, shape index: {}]   ;;  %s2233_s6 = inlined_call_operand.vmem [shape: f32[1,32], index: 6, kind: input, shape index: {}]   ;;  %s2234_s7 = inlined_call_operand.vmem [shape: f32[1,32], index: 7, kind: input, shape index: {}]   ;;  %s2235_s8 = inlined_call_operand.vmem [shape: f32[1,32], index: 8, kind: input, shape index: {}]   ;;  %s2236_s9 = inlined_call_operand.vmem [shape: bf16[32,128], index: 9, kind: input, shape index: {}]   ;;  %s2237_s10 = inlined_call_operand.vmem [shape: f32[1,128], index: 10, kind: input, shape index: {}]   ;;  %s2238_s11 = inlined_call_operand.vmem [shape: bf16[128,32], index: 11, kind: input, shape index: {}]   ;;  %s2239_s12 = inlined_call_operand.vmem [shape: f32[1,32], index: 12, kind: input, shape index: {}]   ;;  %s2240_s13 = inlined_call_operand.hbm [shape: f32[2,8,32], index: 13, kind: output, shape index: {}]  }
   0x1   :  { %2241 = sst [smem:[#allocation5_spill]] %s2227_s0 }
   0x2   :  { %2242 = sst [smem:[#allocation6_spill]] %s2228_s1 }
   0x3   :  { %2243 = sst [smem:[#allocation7_spill]] %s2229_s2 }
   0x4   :  { %18 = vsyncpa [#allocation3], 0 }
   0x5   :  { %20 = vsyncpa [#allocation3 + $0x1], 0  ;;  %s1925_s25 = smov 0   ;;  %s1927_s26 = smov 0  }
   0x6   :  { %s1929_s27 = smov 0   ;;  %s1931_s28 = smov 0  }
   0x7 LB: > { %s1946_s29 = sadd.s32 4294967295, %s1845_s28   ;;  %s1514_s30 = sadd.s32 4294967294, %s1845_s28   ;;  %s1845_s28 = sphi %s1931_s28, %s2252_s28   ;;  %s1841_s27 = sphi %s1929_s27, %s2251_s27   ;;  %s1837_s26 = sphi %s1927_s26, %s2250_s26   ;;  %s1833_s25 = sphi %s1925_s25, %s2249_s25  }
   0x8   : > { %s1950_s14 = sadd.s32 1, %s1845_s28   ;;  %s311_s15 = sadd.s32 1, %s1841_s27 }
   0x9   : > { %s308_s16 = ssub.s32 %s1845_s28, %s1950_s14  ;;  %p321_p0 = scmp.ne.s32.totalorder %s1841_s27, %s1837_s26 }
   0xa   : > { %p309_p1 = scmp.eq.s32.totalorder %s308_s16, 0  ;;  %p322_p2 = scmp.eq.s32.totalorder %s1946_s29, 1 }
   0xb   : > { %p327_p3 = scmp.ne.s32.totalorder %s1837_s26, %s1833_s25  ;;  %p328_p4 = scmp.eq.s32.totalorder %s1514_s30, 1 }
   0xc   : > { %s1961_s17 = scalar_select %p309_p1, %s1841_s27, %s311_s15  }
   0xd   : > { %p1963_p5 = por %p322_p2, %p321_p0  ;;  %p1967_p6 = por %p328_p4, %p327_p3 }
   0xe   : > { %p1517_p7 = scmp.ge.s32.totalorder %s1845_s28, 1  ;;  %p389_p8 = scmp.lt.s32.totalorder %s1845_s28, 3 }
  0x10   : > { %p390_p9 = pnand %p1517_p7, %p389_p8 }
  0x11   : > { %p432_p10 = scmp.lt.s32.totalorder (!%p390_p9), %s1946_s29, 1  ;;  %s2246_s0 = sld [smem:[#allocation5_spill]] (!%p390_p9) }
  0x12   : > { %393 = sbr.rel (%p390_p9) target bundleno = 2434 (0x982), region = 72  ;;  %s2247_s1 = sld [smem:[#allocation6_spill]] (!%p390_p9) }
  0x13   : > { %s2248_s2 = sld [smem:[#allocation7_spill]] (!%p390_p9)  ;;  %s1849_s16 = smov (!%p390_p9), 104  }
  0x14   : > { %s1852_s22 = smov (!%p390_p9), 96   ;;  %s1853_s23 = smov (!%p390_p9), 64  }
  0x17   : > { %s433_s20 = scalar_select %p432_p10, %s1946_s29, 1  ;;  %vm440_vm0 = vcmask 261120   ;;  %v1847_v8 = vmov 0.0   ;;  %vm1848_vm1 = vmmov 0   ;;  %v1520_v14 = vld [vmem:[%s2232_s5] ss:$0 sm:$0xff]  ;;  %v762_v49 = vlaneseq }
  0x18   : > { %v1751_v7 = vld [vmem:[%s2247_s1 + $0x8] sm:$0xff]   ;;  %1597 = vmatprep.subr.bf16.mxu1 %v1847_v8  ;;  %1601 = vmatprep.mubr.msk.bf16.mxu1 %vm1848_vm1, %v1847_v8  ;;  %v1752_v9 = vld [vmem:[%s2247_s1] sm:$0xff]   ;;  %vm568_vm2 = vcmask 64512   ;;  %vm826_vm4 = vcmask 1043456  }
  0x19   : > { %s1519_s21 = sshll.u32 %s433_s20, 3  ;;  %1598 = vmatpush3.bf16.msra.mxu1 %v1751_v7  ;;  %1623 = vmatprep.subr.bf16.mxu0 %v1847_v8  ;;  %v1521_v16 = vld [vmem:[%s2233_s6] ss:$0 sm:$0xff]  ;;  %s1850_s20 = smov 120   ;;  %v763_v50 = vshrl.u32 %v762_v49, 7  ;;  %v765_v51 = vand.u32 127, %v762_v49 }
  0x1a   : > { %s435_s24 = scalar_lea.vmem %s2246_s0, %s1519_s21  ;;  %1599 = vmatprep.subr.bf16.mxu1 %v1847_v8  ;;  %1625 = vmatprep.mubr.msk.bf16.mxu0 %vm1848_vm1, %v1847_v8  ;;  %v1522_v20 = vld [vmem:[%s2248_s2] ss:$0 sm:$0xff]  ;;  %s1851_s21 = smov 112  }
  0x1b   : > { %v1978_v0 = vld [vmem:[%s435_s24] sm:$0xff]  ;;  %vm766_vm3 = vcmp.gt.s32.totalorder %v765_v51, %v763_v50  ;;  %s1555_s24 = sshll.u32 %s1946_s29, 7 }
  0x1c   : > { %v441_v1 = vsel %vm440_vm0, %v1978_v0, 0.0  ;;  %s2185_s1 = scalar_lea.hbm %s2240_s13, %s1555_s24 }
  0x1d   : > { %442 = vadd.xlane.f32.xlu0 %v441_v1  ;;  %1600 = vmatpush3.bf16.msra.mxu1 %v1752_v9 }
  0x1e   : > { %1605 = vmatprep.subr.bf16.mxu1 %v1847_v8 }
  0xa6   : > { %v443_v2 = vpop.xlane.xlu0 %442 }
  0xa7   : > { %v445_v3 = vmul.f32 0.03125, %v443_v2 }
  0xa9   : > { %v446_v4 = vsub.f32 %v1978_v0, %v445_v3 }
  0xab   : > { %v447_v5 = vmul.f32 %v446_v4, %v446_v4 }
  0xad   : > { %v448_v6 = vsel %vm440_vm0, %v447_v5, 0.0 }
  0xae   : > { %449 = vadd.xlane.f32.xlu0 %v448_v6 }
 0x137   : > { %v450_v10 = vpop.xlane.xlu0 %449 }
 0x138   : > { %v451_v11 = vmul.f32 0.03125, %v450_v10 }
 0x13a   : > { %v452_v12 = vadd.f32 1e-05, %v451_v11 }
 0x13c   : > { %1763 = vrsqrt.f32 %v452_v12 }
 0x149   : > { %v1764_v13 = vpop.eup %1763 }
 0x14a   : > { %v454_v15 = vmul.f32 %v1764_v13, %v446_v4 }
 0x14c   : > { %v461_v17 = vmul.f32 %v1520_v14, %v454_v15 }
 0x14e   : > { %v468_v18 = vadd.f32 %v1521_v16, %v461_v17 }
 0x150   : > { %v469_v19 = vpack.c.bf16 %v468_v18, %v468_v18 }
 0x152   : > { %1602 = vmatmul.mubr.msk.bf16.vlgmr.msra.gmra.mxu1 %vm440_vm0, %v469_v19 }
 0x153   : > { %1607 = vmatprep.mubr.msk.bf16.mxu1 %vm1848_vm1, %v1847_v8 }
 0x212   : > { %v530_v21 = vpop.f32.mrf.mxu1 }
 0x213   : > { %v531_v22 = vadd.f32 %v1522_v20, %v530_v21 }
 0x214   : > { %v1603_v23 = vpop.f32.mrf.mxu1 }
 0x215   : > { %558 = vrot.lane.b32.xlu0 %v531_v22, %s1849_s16  ;;  %552 = vrot.lane.b32.xlu1 %v531_v22, %s1850_s20  ;;  %v536_v25 = vmul.f32 0.35355338, %v531_v22  ;;  %v2010_v27 = vpack.c.bf16 %v531_v22, %v531_v22 }
 0x216   : > { %v533_v24 = vpop.f32.mrf.mxu1 }
 0x217   : > { %v547_v36 = vpack.c.bf16 %v536_v25, %v536_v25 }
 0x218   : > { %v1604_v26 = vpop.f32.mrf.mxu1 }
 0x219   : > { %555 = vrot.lane.b32.xlu1 %v531_v22, %s1851_s21  ;;  %544 = vrot.lane.b32.xlu0 %v536_v25, %s1849_s16 }
 0x21d   : > { %566 = vrot.lane.b32.xlu1 %v2010_v27, %s1852_s22 }
 0x287   : > { %v553_v28 = vpop.permute.xlu1 %552  ;;  %v559_v34 = vpop.permute.xlu0 %558 }
 0x288   : > { %v2013_v29 = vpack.c.bf16 %v553_v28, %v553_v28  ;;  %v2021_v35 = vpack.c.bf16 %v559_v34, %v559_v34 }
 0x28a   : > { %616 = vrot.lane.b32.xlu1 %v2013_v29, %s1852_s22 }
 0x28b   : > { %v556_v30 = vpop.permute.xlu1 %555  ;;  %v545_v45 = vpop.permute.xlu0 %544 }
 0x28c   : > { %v2016_v32 = vpack.c.bf16 %v556_v30, %v556_v30  ;;  %v550_v48 = vpack.c.bf16 %v545_v45, %v545_v45 }
 0x28e   : > { %538 = vrot.lane.b32.xlu1 %v536_v25, %s1850_s20  ;;  %s429_s20 = sand.u32 1, %s1837_s26  }
 0x28f   : > { %v567_v31 = vpop.permute.xlu1 %566  ;;  %s1442_s29 = scalar_lea.sflag [#allocation3], %s429_s20 }
 0x290   : > { %v573_v33 = vsel %vm568_vm2, %v567_v31, 0 }
 0x291   : > { %1606 = vmatpush3.bf16.xpose.msra.mxu1 %v573_v33 }
 0x292   : > { %665 = vrot.lane.b32.xlu1 %v2016_v32, %s1852_s22  ;;  %1611 = vmatprep.subr.bf16.mxu1 %v1847_v8 }
 0x296   : > { %714 = vrot.lane.b32.xlu1 %v2021_v35, %s1852_s22  ;;  %s1854_s22 = smov [#allocation2]  }
 0x298   : > { %1608 = vmatmul.mubr.msk.bf16.vlgmr.msra.gmra.mxu1 %vm568_vm2, %v547_v36 }
 0x299   : > { %1613 = vmatprep.mubr.msk.bf16.mxu1 %vm1848_vm1, %v1847_v8 }
 0x29a   : > { %541 = vrot.lane.b32.xlu1 %v536_v25, %s1851_s21  ;;  %s1518_s21 = sshll.u32 %s429_s20, 3 }
 0x29b   : > { %s431_s30 = scalar_lea.vmem [#allocation2], %s1518_s21 }
 0x29c   : > { %s1455_s15 = sshll.u32 %s431_s30, 4  ;;  %s2187_s15 = int_to_ptr.vmem [resolvable:$true] %s1455_s15 }
 0x29d   : > { %s1785_s21 = scalar_lea.vmem %s2187_s15, 128 }
 0x29e   : > { %p1786_p11 = scmp.ne.s32.totalorder %s2187_s15, %s1785_s21 }
 0x2a0   : > { %p1787_p12 = pnand %p1786_p11, %p1963_p5 }
 0x2a2   : > { %p1788_p13 = pneg %p1787_p12 }
 0x2fc   : > { %v617_v37 = vpop.permute.xlu1 %616 }
 0x2fd   : > { %v622_v38 = vsel %vm568_vm2, %v617_v37, 0 }
 0x2fe   : > { %1612 = vmatpush3.bf16.xpose.msra.mxu1 %v622_v38 }
 0x2ff   : > { %1617 = vmatprep.subr.bf16.mxu1 %v1847_v8 }
 0x300   : > { %v539_v39 = vpop.permute.xlu1 %538 }
 0x301   : > { %v548_v40 = vpack.c.bf16 %v539_v39, %v539_v39 }
 0x304   : > { %v666_v41 = vpop.permute.xlu1 %665 }
 0x305   : > { %v671_v42 = vsel %vm568_vm2, %v666_v41, 0  ;;  %1614 = vmatmul.mubr.msk.bf16.vlgmr.msra.gmra.mxu1 %vm568_vm2, %v548_v40 }
 0x306   : > { %1618 = vmatpush3.bf16.xpose.msra.mxu1 %v671_v42  ;;  %1619 = vmatprep.mubr.msk.bf16.mxu1 %vm1848_vm1, %v1847_v8 }
 0x307   : > { %1629 = vmatprep.subr.bf16.mxu1 %v1847_v8 }
 0x308   : > { %v715_v43 = vpop.permute.xlu1 %714 }
 0x309   : > { %v720_v44 = vsel %vm568_vm2, %v715_v43, 0 }
 0x30a   : > { %1624 = vmatpush3.bf16.xpose.msra.mxu0 %v720_v44 }
 0x30b   : > { %1635 = vmatprep.subr.bf16.mxu0 %v1847_v8 }
 0x30c   : > { %v542_v46 = vpop.permute.xlu1 %541 }
 0x30d   : > { %v549_v47 = vpack.c.bf16 %v542_v46, %v542_v46 }
 0x30f   : > { %1620 = vmatmul.mubr.msk.bf16.vlgmr.msra.gmra.mxu1 %vm568_vm2, %v549_v47 }
 0x310   : > { %1631 = vmatprep.mubr.msk.bf16.mxu1 %vm1848_vm1, %v1847_v8 }
 0x311   : > { %1626 = vmatmul.mubr.msk.bf16.vlgmr.msra.gmra.mxu0 %vm568_vm2, %v550_v48 }
 0x312   : > { %1637 = vmatprep.mubr.msk.bf16.mxu0 %vm1848_vm1, %v1847_v8 }
 0x358   : > { %v609_v52 = vpop.f32.mrf.mxu1 }
 0x359   : > { %v769_v53 = vsel %vm766_vm3, -inf, %v609_v52 }
 0x35a   : > { %v1609_v54 = vpop.f32.mrf.mxu1  ;;  %v773_v55 = vsel %vm568_vm2, %v769_v53, -inf }
 0x35b   : > { %774 = vmax.xlane.f32.xlu1 %v773_v55 }
 0x35c   : > { %v612_v56 = vpop.f32.mrf.mxu1 }
 0x35d   : > { %v1019_v56 = vld [vmem:[%s2230_s3 + $0x4] sm:$0xf] }
 0x35e   : > { %v1610_v57 = vpop.f32.mrf.mxu1 }
 0x3c5   : > { %v658_v58 = vpop.f32.mrf.mxu1 }
 0x3c6   : > { %v770_v59 = vsel %vm766_vm3, -inf, %v658_v58 }
 0x3c7   : > { %v1615_v60 = vpop.f32.mrf.mxu1  ;;  %v776_v61 = vsel %vm568_vm2, %v770_v59, -inf }
 0x3c8   : > { %777 = vmax.xlane.f32.xlu0 %v776_v61  ;;  %v1072_v61 = vsel %vm826_vm4, %v1019_v56, 0  ;;  %v1753_v56 = vld [vmem:[%s2236_s9 + $0x8] sm:$0xff]  }
 0x3c9   : > { %v661_v62 = vpop.f32.mrf.mxu1 }
 0x3ca   : > { %v1020_v62 = vld [vmem:[%s2230_s3 + $0x8] sm:$0xf] }
 0x3cb   : > { %v1616_v63 = vpop.f32.mrf.mxu1 }
 0x3cf   : > { %v707_v1 = vpop.f32.mrf.mxu1 }
 0x3d0   : > { %v771_v2 = vsel %vm766_vm3, -inf, %v707_v1 }
 0x3d1   : > { %v1621_v3 = vpop.f32.mrf.mxu1  ;;  %v756_v4 = vpop.f32.mrf.mxu0  ;;  %v779_v5 = vsel %vm568_vm2, %v771_v2, -inf }
 0x3d2   : > { %v772_v6 = vsel %vm766_vm3, -inf, %v756_v4  ;;  %780 = vmax.xlane.f32.xlu0 %v779_v5 }
 0x3d3   : > { %v710_v7 = vpop.f32.mrf.mxu1  ;;  %v1627_v9 = vpop.f32.mrf.mxu0  ;;  %v782_v10 = vsel %vm568_vm2, %v772_v6, -inf }
 0x3d4   : > { %783 = vmax.xlane.f32.xlu1 %v782_v10 }
 0x3d5   : > { %v1622_v11 = vpop.f32.mrf.mxu1  ;;  %v759_v12 = vpop.f32.mrf.mxu0 }
 0x3d7   : > { %v1628_v13 = vpop.f32.mrf.mxu0 }
 0x3e4   : > { %v775_v14 = vpop.xlane.xlu1 %774 }
 0x3e5   : > { %v785_v15 = vsub.f32 %v769_v53, %v775_v14  ;;  %870 = vrot.lane.b32.xlu1 %v2013_v29, %s1853_s23  ;;  %v1018_v53 = vld [vmem:[%s2230_s3] sm:$0xf] }
 0x3e7   : > { %v789_v16 = vmul.f32 1.442695, %v785_v15 }
 0x3e9   : > { %1765 = vpow2.f32 %v789_v16 }
 0x3f6   : > { %v1766_v17 = vpop.eup %1765 }
 0x3f7   : > { %v797_v18 = vsel %vm568_vm2, %v1766_v17, 0.0 }
 0x3f8   : > { %798 = vadd.xlane.f32.xlu0 %v797_v18 }
 0x40e   : > { %821 = vrot.lane.b32.xlu0 %v2010_v27, %s1853_s23 }
 0x451   : > { %v778_v19 = vpop.xlane.xlu0 %777 }
 0x452   : > { %v786_v20 = vsub.f32 %v770_v59, %v778_v19  ;;  %v1026_v59 = vsel %vm826_vm4, %v1018_v53, 0 }
 0x454   : > { %v791_v21 = vmul.f32 1.442695, %v786_v20 }
 0x456   : > { %1767 = vpow2.f32 %v791_v21 }
 0x45b   : > { %v781_v22 = vpop.xlane.xlu0 %780 }
 0x45c   : > { %v787_v23 = vsub.f32 %v771_v2, %v781_v22  ;;  %v1118_v2 = vsel %vm826_vm4, %v1020_v62, 0 }
 0x45d   : > { %v784_v24 = vpop.xlane.xlu1 %783 }
 0x45e   : > { %v793_v25 = vmul.f32 1.442695, %v787_v23  ;;  %v788_v26 = vsub.f32 %v772_v6, %v784_v24  ;;  %v1021_v6 = vld [vmem:[%s2230_s3 + $0xc] sm:$0xf] }
 0x45f   : > { %v1164_v10 = vsel %vm826_vm4, %v1021_v6, 0  ;;  %v1757_v6 = vld [vmem:[%s2238_s11 + $0x28] sm:$0xff]  }
 0x460   : > { %1769 = vpow2.f32 %v793_v25  ;;  %v795_v28 = vmul.f32 1.442695, %v788_v26 }
 0x461   : > { %v871_v29 = vpop.permute.xlu1 %870 }
 0x462   : > { %1771 = vpow2.f32 %v795_v28  ;;  %v876_v30 = vsel %vm826_vm4, %v871_v29, 0 }
 0x463   : > { %v1768_v31 = vpop.eup %1767  ;;  %1636 = vmatpush3.bf16.msra.mxu0 %v876_v30 }
 0x464   : > { %v800_v27 = vsel %vm568_vm2, %v1768_v31, 0.0  ;;  %1647 = vmatprep.subr.bf16.mxu0 %v1847_v8 }
 0x465   : > { %801 = vadd.xlane.f32.xlu1 %v800_v27 }
 0x46d   : > { %v1770_v33 = vpop.eup %1769 }
 0x46e   : > { %v803_v34 = vsel %vm568_vm2, %v1770_v33, 0.0 }
 0x46f   : > { %v1772_v36 = vpop.eup %1771  ;;  %804 = vadd.xlane.f32.xlu0 %v803_v34 }
 0x470   : > { %v806_v37 = vsel %vm568_vm2, %v1772_v36, 0.0 }
 0x471   : > { %807 = vadd.xlane.f32.xlu1 %v806_v37 }
 0x481   : > { %v799_v38 = vpop.xlane.xlu0 %798 }
 0x482   : > { %1773 = vrcp.f32 %v799_v38  ;;  %918 = vrot.lane.b32.xlu1 %v2016_v32, %s1853_s23 }
 0x485   : > { %966 = vrot.lane.b32.xlu0 %v2021_v35, %s1853_s23  ;;  %v822_v39 = vpop.permute.xlu0 %821  ;;  %s1789_s23 = sshll.u32 %s1854_s22, 4  ;;  %s1790_s23 = int_to_ptr.vmem [resolvable:$false] %s1789_s23 }
 0x486   : > { %v828_v40 = vsel %vm826_vm4, %v822_v39, 0  ;;  %s1791_s0 = scalar_lea.vmem %s1790_s23, 256  ;;  %p1792_p0 = scmp.lt.s32.totalorder %s2187_s15, %s1790_s23 }
 0x487   : > { %1630 = vmatpush3.bf16.msra.mxu1 %v828_v40  ;;  %p1793_p1 = scmp.lt.s32.totalorder %s1791_s0, %s1785_s21 }
 0x488   : > { %1641 = vmatprep.subr.bf16.mxu1 %v1847_v8 }
 0x489   : > { %p1794_p2 = por %p1793_p1, %p1792_p0 }
 0x48b   : > { %p1795_p3 = pnand %p1794_p2, %p1788_p13 }
 0x48f   : > { %v1774_v41 = vpop.eup %1773 }
 0x490   : > { %v813_v42 = vmul.f32 %v1774_v41, %v1766_v17 }
 0x492   : > { %v817_v43 = vpack.c.bf16 %v813_v42, %v813_v42 }
 0x494   : > { %1632 = vmatmul.mubr.msk.bf16.vlgmr.msra.gmra.mxu1 %vm568_vm2, %v817_v43  ;;  %v1538_v43 = vld [vmem:[%s2231_s4] ss:$0 sm:$0xff] }
 0x495   : > { %1643 = vmatprep.mubr.msk.bf16.mxu1 %vm1848_vm1, %v1847_v8 }
 0x4ee   : > { %v802_v44 = vpop.xlane.xlu1 %801 }
 0x4ef   : > { %1775 = vrcp.f32 %v802_v44 }
 0x4f8   : > { %v805_v32 = vpop.xlane.xlu0 %804 }
 0x4f9   : > { %1777 = vrcp.f32 %v805_v32 }
 0x4fa   : > { %v808_v45 = vpop.xlane.xlu1 %807 }
 0x4fb   : > { %1779 = vrcp.f32 %v808_v45 }
 0x4fc   : > { %v1776_v35 = vpop.eup %1775  ;;  %v967_v47 = vpop.permute.xlu0 %966 }
 0x4fd   : > { %v814_v46 = vmul.f32 %v1776_v35, %v1768_v31  ;;  %v972_v51 = vsel %vm826_vm4, %v967_v47, 0 }
 0x4fe   : > { %v919_v48 = vpop.permute.xlu1 %918 }
 0x4ff   : > { %v924_v49 = vsel %vm826_vm4, %v919_v48, 0  ;;  %v818_v50 = vpack.c.bf16 %v814_v46, %v814_v46 }
 0x500   : > { %1642 = vmatpush3.bf16.msra.mxu1 %v924_v49 }
 0x501   : > { %1638 = vmatmul.mubr.msk.bf16.vlgmr.msra.gmra.mxu0 %vm568_vm2, %v818_v50  ;;  %1653 = vmatprep.subr.bf16.mxu1 %v1847_v8 }
 0x502   : > { %1648 = vmatpush3.bf16.msra.mxu0 %v972_v51  ;;  %1649 = vmatprep.mubr.msk.bf16.mxu0 %vm1848_vm1, %v1847_v8 }
 0x503   : > { %1659 = vmatprep.subr.bf16.mxu0 %v1847_v8 }
 0x506   : > { %v1778_v52 = vpop.eup %1777 }
 0x507   : > { %v815_v54 = vmul.f32 %v1778_v52, %v1770_v33 }
 0x508   : > { %v1780_v55 = vpop.eup %1779 }
 0x509   : > { %v819_v57 = vpack.c.bf16 %v815_v54, %v815_v54  ;;  %v816_v58 = vmul.f32 %v1780_v55, %v1772_v36 }
 0x50b   : > { %1644 = vmatmul.mubr.msk.bf16.vlgmr.msra.gmra.mxu1 %vm568_vm2, %v819_v57  ;;  %v820_v60 = vpack.c.bf16 %v816_v58, %v816_v58 }
 0x50c   : > { %1654 = vmatpush3.bf16.msra.mxu1 %v1026_v59  ;;  %1655 = vmatprep.mubr.msk.bf16.mxu1 %vm1848_vm1, %v1847_v8 }
 0x50d   : > { %1650 = vmatmul.mubr.msk.bf16.vlgmr.msra.gmra.mxu0 %vm568_vm2, %v820_v60  ;;  %1665 = vmatprep.subr.bf16.mxu1 %v1847_v8 }
 0x50e   : > { %1660 = vmatpush3.bf16.msra.mxu0 %v1072_v61  ;;  %1661 = vmatprep.mubr.msk.bf16.mxu0 %vm1848_vm1, %v1847_v8  ;;  %v1539_v61 = vld [vmem:[%s2234_s7] ss:$0 sm:$0xff] }
 0x50f   : > { %1671 = vmatprep.subr.bf16.mxu0 %v1847_v8 }
 0x554   : > { %v864_v63 = vpop.f32.mrf.mxu1 }
 0x555   : > { %v1014_v1 = vpack.c.bf16 %v864_v63, %v864_v63  ;;  %v1540_v63 = vld [vmem:[%s2235_s8] ss:$0 sm:$0xff] }
 0x556   : > { %v1633_v3 = vpop.f32.mrf.mxu1 }
 0x557   : > { %1656 = vmatmul.mubr.msk.bf16.vlgmr.msra.gmra.mxu1 %vm568_vm2, %v1014_v1 }
 0x558   : > { %v867_v4 = vpop.f32.mrf.mxu1  ;;  %1666 = vmatpush3.bf16.msra.mxu1 %v1118_v2  ;;  %1667 = vmatprep.mubr.msk.bf16.mxu1 %vm1848_vm1, %v1847_v8 }
 0x559   : > { %1677 = vmatprep.subr.bf16.mxu1 %v1847_v8  ;;  %v1755_v4 = vld [vmem:[%s2238_s11 + $0x38] sm:$0xff]  }
 0x55a   : > { %v1634_v5 = vpop.f32.mrf.mxu1 }
 0x55b   : > { %v1756_v5 = vld [vmem:[%s2238_s11 + $0x30] sm:$0xff]  }
 0x5c1   : > { %v912_v7 = vpop.f32.mrf.mxu0 }
 0x5c2   : > { %v1015_v9 = vpack.c.bf16 %v912_v7, %v912_v7  ;;  %v1758_v7 = vld [vmem:[%s2238_s11 + $0x20] sm:$0xff]  }
 0x5c3   : > { %v1639_v11 = vpop.f32.mrf.mxu0 }
 0x5c4   : > { %1662 = vmatmul.mubr.msk.bf16.vlgmr.msra.gmra.mxu0 %vm568_vm2, %v1015_v9  ;;  %v1759_v9 = vld [vmem:[%s2238_s11 + $0x18] sm:$0xff]   ;;  %v1761_v11 = vld [vmem:[%s2238_s11 + $0x8] sm:$0xff]  }
 0x5c5   : > { %v915_v12 = vpop.f32.mrf.mxu0  ;;  %1672 = vmatpush3.bf16.msra.mxu0 %v1164_v10  ;;  %1673 = vmatprep.mubr.msk.bf16.mxu0 %vm1848_vm1, %v1847_v8  ;;  %v1760_v10 = vld [vmem:[%s2238_s11 + $0x10] sm:$0xff]  }
 0x5c6   : > { %1685 = vmatprep.subr.bf16.mxu0 %v1847_v8  ;;  %v1762_v12 = vld [vmem:[%s2238_s11] sm:$0xff]  }
 0x5c7   : > { %v1640_v13 = vpop.f32.mrf.mxu0 }
 0x5c8   : > { %v1541_v13 = vld [vmem:[%s2237_s10] ss:$0 sm:$0xff] }
 0x5cb   : > { %v960_v14 = vpop.f32.mrf.mxu1 }
 0x5cc   : > { %v1016_v15 = vpack.c.bf16 %v960_v14, %v960_v14 }
 0x5cd   : > { %v1645_v16 = vpop.f32.mrf.mxu1  ;;  %v1008_v17 = vpop.f32.mrf.mxu0 }
 0x5ce   : > { %v1017_v18 = vpack.c.bf16 %v1008_v17, %v1008_v17  ;;  %1668 = vmatmul.mubr.msk.bf16.vlgmr.msra.gmra.mxu1 %vm568_vm2, %v1016_v15 }
 0x5cf   : > { %v963_v19 = vpop.f32.mrf.mxu1  ;;  %v1651_v20 = vpop.f32.mrf.mxu0  ;;  %1681 = vmatprep.mubr.msk.bf16.mxu1 %vm1848_vm1, %v1847_v8  ;;  %1678 = vmatpush3.bf16.msra.mxu1 %v1753_v56 }
 0x5d0   : > { %1674 = vmatmul.mubr.msk.bf16.vlgmr.msra.gmra.mxu0 %vm568_vm2, %v1017_v18  ;;  %1679 = vmatprep.subr.bf16.mxu1 %v1847_v8 }
 0x5d1   : > { %v1646_v21 = vpop.f32.mrf.mxu1  ;;  %v1011_v22 = vpop.f32.mrf.mxu0  ;;  %1701 = vmatprep.mubr.msk.bf16.mxu0 %vm1848_vm1, %v1847_v8  ;;  %1686 = vmatpush3.bf16.msra.mxu0 %v1755_v4 }
 0x5d2   : > { %1687 = vmatprep.subr.bf16.mxu0 %v1847_v8 }
 0x5d3   : > { %v1652_v23 = vpop.f32.mrf.mxu0 }
 0x5d5   : > { %1688 = vmatpush3.bf16.msra.mxu0 %v1756_v5 }
 0x5d6   : > { %1689 = vmatprep.subr.bf16.mxu0 %v1847_v8 }
 0x5d9   : > { %1690 = vmatpush3.bf16.msra.mxu0 %v1757_v6 }
 0x5da   : > { %1691 = vmatprep.subr.bf16.mxu0 %v1847_v8 }
 0x5dd   : > { %1692 = vmatpush3.bf16.msra.mxu0 %v1758_v7 }
 0x5de   : > { %1693 = vmatprep.subr.bf16.mxu0 %v1847_v8 }
 0x5e1   : > { %1694 = vmatpush3.bf16.msra.mxu0 %v1759_v9 }
 0x5e2   : > { %1695 = vmatprep.subr.bf16.mxu0 %v1847_v8 }
 0x5e5   : > { %1696 = vmatpush3.bf16.msra.mxu0 %v1760_v10 }
 0x5e6   : > { %1697 = vmatprep.subr.bf16.mxu0 %v1847_v8 }
 0x5e9   : > { %1698 = vmatpush3.bf16.msra.mxu0 %v1761_v11 }
 0x5ea   : > { %1699 = vmatprep.subr.bf16.mxu0 %v1847_v8 }
 0x5ed   : > { %1700 = vmatpush3.bf16.msra.mxu0 %v1762_v12 }
 0x617   : > { %v1062_v24 = vpop.f32.mrf.mxu1 }
 0x618   : > { %v1206_v34 = vsel %vm440_vm0, %v1062_v24, 0.0 }
 0x619   : > { %v1657_v25 = vpop.f32.mrf.mxu1 }
 0x61b   : > { %v1065_v26 = vpop.f32.mrf.mxu1 }
 0x61d   : > { %v1658_v28 = vpop.f32.mrf.mxu1 }
 0x684   : > { %v1108_v29 = vpop.f32.mrf.mxu0 }
 0x685   : > { %v1207_v33 = vsel %vm440_vm0, %v1108_v29, 0.0  ;;  %v1545_v29 = vld [vmem:[%s2239_s12] ss:$0 sm:$0xff] }
 0x686   : > { %v1663_v30 = vpop.f32.mrf.mxu0  ;;  %v1208_v36 = vadd.f32 %v1207_v33, %v1206_v34 }
 0x688   : > { %v1111_v31 = vpop.f32.mrf.mxu0 }
 0x68a   : > { %v1664_v27 = vpop.f32.mrf.mxu0 }
 0x68e   : > { %v1154_v37 = vpop.f32.mrf.mxu1 }
 0x68f   : > { %v1209_v38 = vsel %vm440_vm0, %v1154_v37, 0.0 }
 0x690   : > { %v1210_v39 = vadd.f32 %v1209_v38, %v1208_v36  ;;  %v1669_v40 = vpop.f32.mrf.mxu1  ;;  %v1200_v41 = vpop.f32.mrf.mxu0 }
 0x691   : > { %v1211_v42 = vsel %vm440_vm0, %v1200_v41, 0.0 }
 0x692   : > { %v1212_v44 = vadd.f32 %v1211_v42, %v1210_v39  ;;  %v1157_v32 = vpop.f32.mrf.mxu1  ;;  %v1675_v45 = vpop.f32.mrf.mxu0 }
 0x694   : > { %v1220_v35 = vadd.f32 %v1538_v43, %v1212_v44  ;;  %v1670_v46 = vpop.f32.mrf.mxu1  ;;  %v1203_v47 = vpop.f32.mrf.mxu0 }
 0x696   : > { %v1676_v48 = vpop.f32.mrf.mxu0  ;;  %v2122_v49 = vadd.f32 %v1220_v35, %v1978_v0  ;;  %v1754_v0 = vld [vmem:[%s2236_s9] sm:$0xff]  }
 0x697   : > { %1680 = vmatpush3.bf16.msra.mxu1 %v1754_v0 }
 0x698   : > { %v1224_v50 = vsel %vm440_vm0, %v2122_v49, 0.0 }
 0x699   : > { %1225 = vadd.xlane.f32.xlu1 %v1224_v50 }
 0x722   : > { %v1226_v51 = vpop.xlane.xlu1 %1225 }
 0x723   : > { %v1227_v52 = vmul.f32 0.03125, %v1226_v51 }
 0x725   : > { %v1228_v53 = vsub.f32 %v2122_v49, %v1227_v52 }
 0x727   : > { %v1229_v54 = vmul.f32 %v1228_v53, %v1228_v53 }
 0x729   : > { %v1230_v55 = vsel %vm440_vm0, %v1229_v54, 0.0 }
 0x72a   : > { %1231 = vadd.xlane.f32.xlu0 %v1230_v55 }
 0x7b3   : > { %v1232_v57 = vpop.xlane.xlu0 %1231 }
 0x7b4   : > { %v1233_v58 = vmul.f32 0.03125, %v1232_v57 }
 0x7b6   : > { %v1234_v59 = vadd.f32 1e-05, %v1233_v58 }
 0x7b8   : > { %1781 = vrsqrt.f32 %v1234_v59 }
 0x7c5   : > { %v1782_v60 = vpop.eup %1781 }
 0x7c6   : > { %v1236_v62 = vmul.f32 %v1782_v60, %v1228_v53 }
 0x7c8   : > { %v1243_v1 = vmul.f32 %v1539_v61, %v1236_v62 }
 0x7ca   : > { %v1250_v2 = vadd.f32 %v1540_v63, %v1243_v1 }
 0x7cc   : > { %v1251_v3 = vpack.c.bf16 %v1250_v2, %v1250_v2 }
 0x7ce   : > { %1682 = vmatmul.mubr.msk.bf16.vlgmr.msra.gmra.mxu1 %vm440_vm0, %v1251_v3 }
 0x88e   : > { %v1312_v14 = vpop.f32.mrf.mxu1 }
 0x88f   : > { %v1313_v15 = vadd.f32 %v1541_v13, %v1312_v14 }
 0x890   : > { %v1683_v16 = vpop.f32.mrf.mxu1 }
 0x891   : > { %v1319_v17 = vmul.f32 0.044715, %v1313_v15  ;;  %v1318_v8 = vmul.f32 0.5, %v1313_v15 }
 0x892   : > { %v1315_v18 = vpop.f32.mrf.mxu1 }
 0x893   : > { %v1320_v19 = vmul.f32 %v1319_v17, %v1313_v15 }
 0x894   : > { %v1684_v20 = vpop.f32.mrf.mxu1 }
 0x895   : > { %v1321_v21 = vmul.f32 %v1320_v19, %v1313_v15 }
 0x897   : > { %v1322_v22 = vadd.f32 %v1321_v21, %v1313_v15 }
 0x899   : > { %v1323_v23 = vmul.f32 0.7978846, %v1322_v22 }
 0x89b   : > { %1783 = vtanh.f32 %v1323_v23 }
 0x8a8   : > { %v1784_v24 = vpop.eup %1783 }
 0x8a9   : > { %v1325_v25 = vadd.f32 1.0, %v1784_v24 }
 0x8ab   : > { %v1326_v26 = vmul.f32 %v1325_v25, %v1318_v8 }
 0x8ad   : > { %v1327_v28 = vpack.c.bf16 %v1326_v26, %v1326_v26 }
 0x8af   : > { %1702 = vmatmul.mubr.bf16.vlgmr.msra.gmra.mxu0 %v1327_v28 }
 0x96f   : > { %v1433_v30 = vpop.f32.mrf.mxu0 }
 0x970   : > { %v1434_v31 = vadd.f32 %v1545_v29, %v1433_v30 }
 0x971   : > { %v1703_v27 = vpop.f32.mrf.mxu0 }
 0x972   : > { %v1439_v33 = vadd.f32 %v1434_v31, %v2122_v49 }
 0x973   : > { %v1436_v34 = vpop.f32.mrf.mxu0 }
 0x974   : > { %1440 = vst.msk [vmem:[%s431_s30] sm:$0xff] %vm440_vm0, %v1439_v33 }
 0x975   : > { %v1704_v36 = vpop.f32.mrf.mxu0 }
 0x976   : > { %1798 = shalt.err (!%p1795_p3)
}
 0x977   : > { %s1799_s24 = scalar_lea.hbm %s2185_s1, 128  ;;  %s1803_s16 = scalar_lea.hbm %s2240_s13, 256 }
 0x978   : > { %p1800_p4 = scmp.ne.s32.totalorder %s2185_s1, %s1799_s24  ;;  %p1804_p9 = scmp.lt.s32.totalorder %s2185_s1, %s2240_s13 }
 0x979   : > { %p1805_p10 = scmp.lt.s32.totalorder %s1803_s16, %s1799_s24 }
 0x97a   : > { %p1801_p7 = pnand %p1800_p4, %p1963_p5 }
 0x97b   : > { %p1806_p11 = por %p1805_p10, %p1804_p9 }
 0x97c   : > { %p1802_p8 = pneg %p1801_p7 }
 0x97e   : > { %p1807_p12 = pnand %p1806_p11, %p1802_p8 }
 0x980   : > { %1810 = shalt.err (!%p1807_p12)
}
 0x981   : > { %1705 = dma.vmem_to_hbm [thread:$0]  (%p1963_p5), %s2187_s15, 128, %s2185_s1, %s1442_s29  }
 0x982 PF: > { %p1711_p13 = scmp.ge.s32.totalorder %s1845_s28, 2  ;;  %s1467_s21 = sand.u32 1, %s1833_s25  }
 0x983   : > { %s1468_s2 = scalar_lea.sflag [#allocation3], %s1467_s21 }
 0x984   : > { %p1708_p0 = pnand %p1711_p13, %p1967_p6 }
 0x986   : > { %p1709_p1 = pneg %p1708_p0 }
 0x988   : > { %1828 = dma.done.wait (%p1709_p1), %s1468_s2, 128  }
 0x989   : > { %1830 = vsyncadd (%p1709_p1), %s1468_s2, 4294967168  ;;  %p23_p2 = scmp.ge.s32.totalorder %s1950_s14, 4   ;;  %s2249_s25 = smov %s1837_s26 }
 0x98a   : > { %s2250_s26 = smov %s1841_s27  ;;  %s2251_s27 = smov %s1961_s17 }
 0x98b   : > { %s2252_s28 = smov %s1950_s14  ;;  %25 = sbr.rel (!%p23_p2) target bundleno = 7 (0x7), region = 107 }
 0x990   :  { %1473 = vsyncpa [#allocation3], 1 }
 0x991   :  { %1475 = vsyncpa [#allocation3 + $0x1], 1 }

</bundles_post_ra>
